<compile_context>
chip_gen: v7x
topology: tpu7x:2x2x1
jax: 0.10.0
libtpu: 0.0.40
codegen_flags: <defaults>
</compile_context>

<pallas_src>
import jax
import jax.numpy as jnp
import numpy as np
from jax.experimental import pallas as pl
from jax.experimental.pallas import tpu as pltpu

NUM_ACTIVATIONS = 8
_LANE = 128


# ----------------------------------------------------------------------------
# In-kernel activation math (f32).
# ----------------------------------------------------------------------------
def _stable_sigmoid(x):
    en = jnp.exp(-jnp.abs(x))
    return jnp.where(x >= 0.0, 1.0 / (1.0 + en), en / (1.0 + en))


def _activation_bank(x):
    """All 8 candidates, sharing two exp() pushes per element."""
    ax = jnp.abs(x)
    pos = x >= 0.0
    en = jnp.exp(-ax)                        # exp(-|x|): never overflows
    inv = 1.0 / (1.0 + en)
    sig = jnp.where(pos, inv, en * inv)      # sigmoid(x)
    en2 = en * en                            # exp(-2|x|)
    tanh_abs = (1.0 - en2) / (1.0 + en2)
    tanh = jnp.where(pos, tanh_abs, -tanh_abs)
    eg = jnp.exp(-1.702 * ax)
    invg = 1.0 / (1.0 + eg)
    sig_g = jnp.where(pos, invg, eg * invg)  # sigmoid(1.702 x)
    return [
        jnp.maximum(x, 0.0),                 # 0 relu
        sig,                                 # 1 sigmoid
        tanh,                                # 2 tanh
        jnp.where(pos, x, 0.01 * x),         # 3 leaky_relu
        jnp.where(pos, x, en - 1.0),         # 4 elu  (x<0 => exp(x)=exp(-|x|))
        x * sig_g,                           # 5 gelu (sigmoid approximation)
        x * sig,                             # 6 silu
        x,                                   # 7 identity (default)
    ]


def _single_activation(x, k):
    """One activation only (uniform fast path); k is a Python int."""
    if k == 0:
        return jnp.maximum(x, 0.0)
    if k == 1:
        return _stable_sigmoid(x)
    if k == 2:
        en2 = jnp.exp(-2.0 * jnp.abs(x))
        t = (1.0 - en2) / (1.0 + en2)
        return jnp.where(x >= 0.0, t, -t)
    if k == 3:
        return jnp.where(x >= 0.0, x, 0.01 * x)
    if k == 4:
        return jnp.where(x >= 0.0, x, jnp.exp(jnp.minimum(x, 0.0)) - 1.0)
    if k == 5:
        return x * _stable_sigmoid(1.702 * x)
    if k == 6:
        return x * _stable_sigmoid(x)
    return x


# ----------------------------------------------------------------------------
# Kernels
# ----------------------------------------------------------------------------
def _act_kernel(uniform_ref, x_ref, code_ref, o_ref):
    """Per-column activation selection (mixed-code path).

    uniform_ref: (num_tiles,) int32 in SMEM (scalar prefetch); per-tile uniform
                 activation code, or -1 if the tile mixes codes.
    x_ref:       (B, TILE_R, 128) input block
    code_ref:    (TILE_R, 128) int32 activation codes (broadcast over B)
    o_ref:       (B, TILE_R, 128) output block
    """
    u = uniform_ref[pl.program_id(0)]
    x = x_ref[...].astype(jnp.float32)

    @pl.when(u < 0)
    def _general():
        code = code_ref[...]                 # (TILE_R, 128) broadcasts over B
        cands = _activation_bank(x)
        out = cands[-1]
        for k in range(NUM_ACTIVATIONS - 2, -1, -1):
            out = jnp.where(code == k, cands[k], out)
        o_ref[...] = out.astype(o_ref.dtype)

    for k in range(NUM_ACTIVATIONS):
        @pl.when(u == k)
        def _uniform(k=k):
            o_ref[...] = _single_activation(x, k).astype(o_ref.dtype)


def _make_uniform_kernel(k):
    """Specialized kernel: same activation k (Python int) everywhere.

    No codes input, no scalar prefetch, no select -> pure elementwise pass at
    the HBM roofline.
    """
    def kern(x_ref, o_ref):
        x = x_ref[...].astype(jnp.float32)
        o_ref[...] = _single_activation(x, k).astype(o_ref.dtype)
    return kern


# ----------------------------------------------------------------------------
# Tiling
# ----------------------------------------------------------------------------
def _choose_tile_r(B, R, itemsize):
    """Rows (of 128 lanes) per grid step, multiple of 8 (or == R when R <= 8).

    VMEM per step (pipeline double-buffers every block):
      x in + out: 4 * B * tile_r * 128 * itemsize
      codes:      2 * tile_r * 128 * 4
    Budget ~12 MiB: fits v5e's scoped default and leaves headroom inside
    v7x's 64 MiB physical VMEM.  Beyond ~1024 rows the per-step overhead
    (~0.35 us) is already negligible.
    """
    budget = 12 * 1024 * 1024
    bytes_per_row = 4 * B * _LANE * itemsize + 2 * _LANE * 4
    max_rows = max(8, int(budget // bytes_per_row) // 8 * 8)
    if R <= 8:
        return R                              # single block == full rows axis
    if R <= max_rows:
        # aim for >= 2 grid steps so the parallel axis can shard across the
        # two TensorCores on v7x
        half = (((R + 1) // 2) + 7) // 8 * 8
        return int(min(half, max_rows))
    return int(max_rows)


# ----------------------------------------------------------------------------
# Wrapper
# ----------------------------------------------------------------------------
def conv_layer_activation(x, activations):
    """Apply per-feature activations to an NCHW tensor.

    x:           (B, C, H, W) float array
    activations: (C*H*W,) int array / list of activation codes in
                 [0, NUM_ACTIVATIONS)
    returns:     array of x.shape and x.dtype
    """
    B = x.shape[0]
    F = int(np.prod(x.shape[1:]))
    orig_shape = x.shape

    # Host-static codes (the common case: a fixed per-layer schedule) enable
    # compile-time specialization; traced codes fall back to the runtime path.
    try:
        static_codes = np.asarray(activations, dtype=np.int32).reshape(F)
    except (TypeError, jax.errors.ConcretizationTypeError):
        static_codes = None

    x_flat = x.reshape(B, F)

    rem = F % _LANE
    pad = (_LANE - rem) if rem else 0
    if rem:
        # TODO(synk): ragged F (not a multiple of 128) falls back to a one-time
        # pad + slice (extra HBM copy); could be avoided with masked stores.
        x_flat = jnp.pad(x_flat, ((0, 0), (0, pad)))
    Fp = F + pad
    R = Fp // _LANE

    x3 = x_flat.reshape(B, R, _LANE)          # free reshape (contiguous)
    tile_r = _choose_tile_r(B, R, x.dtype.itemsize)
    num_tiles = (R + tile_r - 1) // tile_r
    pad_rows = num_tiles * tile_r - R

    cparams = pltpu.CompilerParams(
        dimension_semantics=("parallel",),
        vmem_limit_bytes=32 * 1024 * 1024,
    )
    block = (B, tile_r, _LANE)
    out_shape = jax.ShapeDtypeStruct((B, R, _LANE), x.dtype)

    # -------- Fully-uniform specialization (covers OPTIM_MODE != 0) --------
    if static_codes is not None and static_codes.min() == static_codes.max():
        k = int(static_codes[0])
        if not (0 <= k < NUM_ACTIVATIONS):
            k = NUM_ACTIVATIONS - 1           # unknown code -> identity
        out3 = pl.pallas_call(
            _make_uniform_kernel(k),
            out_shape=out_shape,
            grid_spec=pltpu.PrefetchScalarGridSpec(
                num_scalar_prefetch=0,
                grid=(num_tiles,),
                in_specs=[pl.BlockSpec(block, lambda i: (0, i, 0))],
                out_specs=pl.BlockSpec(block, lambda i: (0, i, 0)),
            ),
            compiler_params=cparams,
        )(x3)
        out_flat = out3.reshape(B, Fp)
        if rem:
            out_flat = out_flat[:, :F]
        return out_flat.reshape(orig_shape)

    # -------- Mixed / runtime codes path --------
    if static_codes is not None:
        # Per-tile uniform-code flag computed on the host (no XLA reduce op).
        codes_np = static_codes
        if rem:
            codes_np = np.pad(codes_np, (0, pad),
                              constant_values=NUM_ACTIVATIONS - 1)
        codes_rows_np = codes_np.reshape(R, _LANE)
        cpad = (np.pad(codes_rows_np, ((0, pad_rows), (0, 0)), mode="edge")
                if pad_rows else codes_rows_np)
        ct = cpad.reshape(num_tiles, tile_r * _LANE)
        cmin, cmax = ct.min(axis=1), ct.max(axis=1)
        uniform = jnp.asarray(
            np.where((cmin == cmax) & (cmin >= 0) & (cmin < NUM_ACTIVATIONS),
                     cmin, -1).astype(np.int32))
        codes_rows = jnp.asarray(codes_rows_np)
    else:
        codes = jnp.asarray(activations, dtype=jnp.int32).reshape(F)
        if rem:
            codes = jnp.pad(codes, (0, pad),
                            constant_values=NUM_ACTIVATIONS - 1)
        codes_rows = codes.reshape(R, _LANE)
        cpad = (jnp.pad(codes_rows, ((0, pad_rows), (0, 0)), mode="edge")
                if pad_rows else codes_rows)
        ct = cpad.reshape(num_tiles, tile_r * _LANE)
        cmin, cmax = ct.min(axis=1), ct.max(axis=1)
        uniform = jnp.where(
            (cmin == cmax) & (cmin >= 0) & (cmin < NUM_ACTIVATIONS),
            cmin, -1).astype(jnp.int32)

    out3 = pl.pallas_call(
        _act_kernel,
        out_shape=out_shape,
        grid_spec=pltpu.PrefetchScalarGridSpec(
            num_scalar_prefetch=1,
            grid=(num_tiles,),
            in_specs=[
                pl.BlockSpec(block, lambda i, u: (0, i, 0)),
                pl.BlockSpec((tile_r, _LANE), lambda i, u: (i, 0)),
            ],
            out_specs=pl.BlockSpec(block, lambda i, u: (0, i, 0)),
        ),
        compiler_params=cparams,
    )(uniform, x3, codes_rows)

    out_flat = out3.reshape(B, Fp)
    if rem:
        out_flat = out_flat[:, :F]
    return out_flat.reshape(orig_shape)


# ----------------------------------------------------------------------------
# Pure-JAX reference for correctness checking.
# ----------------------------------------------------------------------------
def _reference(x, activations):
    B = x.shape[0]
    F = int(np.prod(x.shape[1:]))
    xf = x.reshape(B, F).astype(jnp.float32)
    code = jnp.asarray(activations, jnp.int32).reshape(1, F)
    sig = jax.nn.sigmoid(xf)
    cands = [
        jnp.maximum(xf, 0.0),
        sig,
        jnp.tanh(xf),
        jnp.where(xf > 0.0, xf, 0.01 * xf),
        jnp.where(xf > 0.0, xf, jnp.exp(xf) - 1.0),
        xf * jax.nn.sigmoid(1.702 * xf),
        xf * sig,
        xf,
    ]
    out = cands[-1]
    for i in range(len(cands) - 2, -1, -1):
        out = jnp.where(code == i, cands[i], out)
    return out.astype(x.dtype).reshape(x.shape)


if __name__ == "__main__":
    key = jax.random.PRNGKey(0)
    B, C, H, W = 2, 4, 16, 16
    x = jax.random.normal(key, (B, C, H, W), dtype=jnp.float32)
    F = C * H * W

    # 1) Mixed per-feature codes (OPTIM_MODE == 0 path; 8-way select kernel).
    acts_mixed = (np.arange(F) % NUM_ACTIVATIONS).astype(np.int32)
    out = jax.block_until_ready(conv_layer_activation(x, acts_mixed))
    ref = _reference(x, acts_mixed)
    np.testing.assert_allclose(np.asarray(out), np.asarray(ref),
                               rtol=1e-5, atol=1e-5)
    assert out.shape == x.shape and out.dtype == x.dtype

    # 2) Uniform codes, host-static (OPTIM_MODE != 0; specialized kernel,
    #    no codes DMA).
    acts_uni = np.full((F,), 6, dtype=np.int32)      # silu everywhere
    out_u = jax.block_until_ready(conv_layer_activation(x, acts_uni))
    ref_u = _reference(x, acts_uni)
    np.testing.assert_allclose(np.asarray(out_u), np.asarray(ref_u),
                               rtol=1e-5, atol=1e-5)

    # 3) Uniform codes, traced (exercises the runtime per-tile uniform path
    #    of the general kernel under jit).
    out_u2 = jax.block_until_ready(
        jax.jit(conv_layer_activation)(x, jnp.asarray(acts_uni)))
    np.testing.assert_allclose(np.asarray(out_u2), np.asarray(ref_u),
                               rtol=1e-5, atol=1e-5)

    print("KERNEL_OK")
</pallas_src>

<mosaic_0001>
module attributes {stable_mosaic.version = 11 : i64} {
  func.func @_act_kernel(%arg0: i32, %arg1: memref<1xi32, #tpu.memory_space<smem>>, %arg2: memref<2x8x128xf32, #tpu.memory_space<vmem>>, %arg3: memref<8x128xi32, #tpu.memory_space<vmem>>, %arg4: memref<2x8x128xf32, #tpu.memory_space<vmem>>) attributes {dimension_semantics = [#tpu.dimension_semantics<parallel>], iteration_bounds = array<i64: 1>, scalar_prefetch = 1 : i64, scratch_operands = 0 : i64, tpu.core_type = #tpu.core_type<tc>, window_params = [{transform_indices = @transform_0, window_bounds = array<i64: 2, 8, 128>}, {transform_indices = @transform_1, window_bounds = array<i64: 8, 128>}, {transform_indices = @transform_2, window_bounds = array<i64: 2, 8, 128>}]} {
    %0 = arith.index_cast %arg0 : i32 to index
    %1 = memref.load %arg1[%0] : memref<1xi32, #tpu.memory_space<smem>>
    %c0 = arith.constant 0 : index
    %c0_0 = arith.constant 0 : index
    %c0_1 = arith.constant 0 : index
    %2 = vector.load %arg2[%c0, %c0_0, %c0_1] : memref<2x8x128xf32, #tpu.memory_space<vmem>>, vector<2x8x128xf32>
    %c0_i32 = arith.constant 0 : i32
    %3 = arith.cmpi slt, %1, %c0_i32 : i32
    %4 = arith.extui %3 : i1 to i32
    %c0_i32_2 = arith.constant 0 : i32
    %5 = arith.cmpi ne, %4, %c0_i32_2 : i32
    scf.if %5 {
      %c0_12 = arith.constant 0 : index
      %c0_13 = arith.constant 0 : index
      %30 = vector.load %arg3[%c0_12, %c0_13] : memref<8x128xi32, #tpu.memory_space<vmem>>, vector<8x128xi32>
      %31 = math.absf %2 : vector<2x8x128xf32>
      %cst = arith.constant 0.000000e+00 : f32
      %32 = vector.broadcast %cst : f32 to vector<2x8x128xf32>
      %33 = arith.cmpf oge, %2, %32 : vector<2x8x128xf32>
      %cst_14 = arith.constant 0.000000e+00 : f32
      %34 = vector.broadcast %cst_14 : f32 to vector<2x8x128xf32>
      %35 = arith.subf %34, %31 : vector<2x8x128xf32>
      %36 = math.exp %35 : vector<2x8x128xf32>
      %cst_15 = arith.constant 1.000000e+00 : f32
      %37 = vector.broadcast %cst_15 : f32 to vector<2x8x128xf32>
      %38 = arith.addf %37, %36 : vector<2x8x128xf32>
      %cst_16 = arith.constant 1.000000e+00 : f32
      %39 = vector.broadcast %cst_16 : f32 to vector<2x8x128xf32>
      %40 = arith.divf %39, %38 : vector<2x8x128xf32>
      %41 = arith.mulf %36, %40 : vector<2x8x128xf32>
      %42 = arith.select %33, %40, %41 : vector<2x8x128xi1>, vector<2x8x128xf32>
      %43 = arith.mulf %36, %36 : vector<2x8x128xf32>
      %cst_17 = arith.constant 1.000000e+00 : f32
      %44 = vector.broadcast %cst_17 : f32 to vector<2x8x128xf32>
      %45 = arith.subf %44, %43 : vector<2x8x128xf32>
      %cst_18 = arith.constant 1.000000e+00 : f32
      %46 = vector.broadcast %cst_18 : f32 to vector<2x8x128xf32>
      %47 = arith.addf %46, %43 : vector<2x8x128xf32>
      %48 = arith.divf %45, %47 : vector<2x8x128xf32>
      %cst_19 = arith.constant 0.000000e+00 : f32
      %49 = vector.broadcast %cst_19 : f32 to vector<2x8x128xf32>
      %50 = arith.subf %49, %48 : vector<2x8x128xf32>
      %51 = arith.select %33, %48, %50 : vector<2x8x128xi1>, vector<2x8x128xf32>
      %cst_20 = arith.constant -1.702000e+00 : f32
      %52 = vector.broadcast %cst_20 : f32 to vector<2x8x128xf32>
      %53 = arith.mulf %52, %31 : vector<2x8x128xf32>
      %54 = math.exp %53 : vector<2x8x128xf32>
      %cst_21 = arith.constant 1.000000e+00 : f32
      %55 = vector.broadcast %cst_21 : f32 to vector<2x8x128xf32>
      %56 = arith.addf %55, %54 : vector<2x8x128xf32>
      %cst_22 = arith.constant 1.000000e+00 : f32
      %57 = vector.broadcast %cst_22 : f32 to vector<2x8x128xf32>
      %58 = arith.divf %57, %56 : vector<2x8x128xf32>
      %59 = arith.mulf %54, %58 : vector<2x8x128xf32>
      %60 = arith.select %33, %58, %59 : vector<2x8x128xi1>, vector<2x8x128xf32>
      %cst_23 = arith.constant 0.000000e+00 : f32
      %61 = vector.broadcast %cst_23 : f32 to vector<2x8x128xf32>
      %62 = arith.maximumf %2, %61 : vector<2x8x128xf32>
      %cst_24 = arith.constant 0.00999999977 : f32
      %63 = vector.broadcast %cst_24 : f32 to vector<2x8x128xf32>
      %64 = arith.mulf %63, %2 : vector<2x8x128xf32>
      %65 = arith.select %33, %2, %64 : vector<2x8x128xi1>, vector<2x8x128xf32>
      %cst_25 = arith.constant 1.000000e+00 : f32
      %66 = vector.broadcast %cst_25 : f32 to vector<2x8x128xf32>
      %67 = arith.subf %36, %66 : vector<2x8x128xf32>
      %68 = arith.select %33, %2, %67 : vector<2x8x128xi1>, vector<2x8x128xf32>
      %69 = arith.mulf %2, %60 : vector<2x8x128xf32>
      %70 = arith.mulf %2, %42 : vector<2x8x128xf32>
      %c6_i32_26 = arith.constant 6 : i32
      %71 = vector.broadcast %c6_i32_26 : i32 to vector<8x128xi32>
      %72 = arith.cmpi eq, %30, %71 : vector<8x128xi32>
      %73 = vector.shape_cast %72 : vector<8x128xi1> to vector<1x8x128xi1>
      %74 = vector.broadcast %73 : vector<1x8x128xi1> to vector<2x8x128xi1>
      %75 = arith.select %74, %70, %2 : vector<2x8x128xi1>, vector<2x8x128xf32>
      %c5_i32_27 = arith.constant 5 : i32
      %76 = vector.broadcast %c5_i32_27 : i32 to vector<8x128xi32>
      %77 = arith.cmpi eq, %30, %76 : vector<8x128xi32>
      %78 = vector.shape_cast %77 : vector<8x128xi1> to vector<1x8x128xi1>
      %79 = vector.broadcast %78 : vector<1x8x128xi1> to vector<2x8x128xi1>
      %80 = arith.select %79, %69, %75 : vector<2x8x128xi1>, vector<2x8x128xf32>
      %c4_i32_28 = arith.constant 4 : i32
      %81 = vector.broadcast %c4_i32_28 : i32 to vector<8x128xi32>
      %82 = arith.cmpi eq, %30, %81 : vector<8x128xi32>
      %83 = vector.shape_cast %82 : vector<8x128xi1> to vector<1x8x128xi1>
      %84 = vector.broadcast %83 : vector<1x8x128xi1> to vector<2x8x128xi1>
      %85 = arith.select %84, %68, %80 : vector<2x8x128xi1>, vector<2x8x128xf32>
      %c3_i32_29 = arith.constant 3 : i32
      %86 = vector.broadcast %c3_i32_29 : i32 to vector<8x128xi32>
      %87 = arith.cmpi eq, %30, %86 : vector<8x128xi32>
      %88 = vector.shape_cast %87 : vector<8x128xi1> to vector<1x8x128xi1>
      %89 = vector.broadcast %88 : vector<1x8x128xi1> to vector<2x8x128xi1>
      %90 = arith.select %89, %65, %85 : vector<2x8x128xi1>, vector<2x8x128xf32>
      %c2_i32_30 = arith.constant 2 : i32
      %91 = vector.broadcast %c2_i32_30 : i32 to vector<8x128xi32>
      %92 = arith.cmpi eq, %30, %91 : vector<8x128xi32>
      %93 = vector.shape_cast %92 : vector<8x128xi1> to vector<1x8x128xi1>
      %94 = vector.broadcast %93 : vector<1x8x128xi1> to vector<2x8x128xi1>
      %95 = arith.select %94, %51, %90 : vector<2x8x128xi1>, vector<2x8x128xf32>
      %c1_i32_31 = arith.constant 1 : i32
      %96 = vector.broadcast %c1_i32_31 : i32 to vector<8x128xi32>
      %97 = arith.cmpi eq, %30, %96 : vector<8x128xi32>
      %98 = vector.shape_cast %97 : vector<8x128xi1> to vector<1x8x128xi1>
      %99 = vector.broadcast %98 : vector<1x8x128xi1> to vector<2x8x128xi1>
      %100 = arith.select %99, %42, %95 : vector<2x8x128xi1>, vector<2x8x128xf32>
      %c0_i32_32 = arith.constant 0 : i32
      %101 = vector.broadcast %c0_i32_32 : i32 to vector<8x128xi32>
      %102 = arith.cmpi eq, %30, %101 : vector<8x128xi32>
      %103 = vector.shape_cast %102 : vector<8x128xi1> to vector<1x8x128xi1>
      %104 = vector.broadcast %103 : vector<1x8x128xi1> to vector<2x8x128xi1>
      %105 = arith.select %104, %62, %100 : vector<2x8x128xi1>, vector<2x8x128xf32>
      %c0_33 = arith.constant 0 : index
      %c0_34 = arith.constant 0 : index
      %c0_35 = arith.constant 0 : index
      %106 = vector.load %arg4[%c0_33, %c0_34, %c0_35] : memref<2x8x128xf32, #tpu.memory_space<vmem>>, vector<2x8x128xf32>
      tpu.vector_store %arg4[%c0_33, %c0_34, %c0_35], %105 {strides = array<i32>} : memref<2x8x128xf32, #tpu.memory_space<vmem>>, vector<2x8x128xf32>,
    } else {
    }
    %c0_i32_3 = arith.constant 0 : i32
    %6 = arith.cmpi eq, %1, %c0_i32_3 : i32
    %7 = arith.extui %6 : i1 to i32
    %c0_i32_4 = arith.constant 0 : i32
    %8 = arith.cmpi ne, %7, %c0_i32_4 : i32
    scf.if %8 {
      %cst = arith.constant 0.000000e+00 : f32
      %30 = vector.broadcast %cst : f32 to vector<2x8x128xf32>
      %31 = arith.maximumf %2, %30 : vector<2x8x128xf32>
      %c0_12 = arith.constant 0 : index
      %c0_13 = arith.constant 0 : index
      %c0_14 = arith.constant 0 : index
      %32 = vector.load %arg4[%c0_12, %c0_13, %c0_14] : memref<2x8x128xf32, #tpu.memory_space<vmem>>, vector<2x8x128xf32>
      tpu.vector_store %arg4[%c0_12, %c0_13, %c0_14], %31 {strides = array<i32>} : memref<2x8x128xf32, #tpu.memory_space<vmem>>, vector<2x8x128xf32>,
    } else {
    }
    %c1_i32 = arith.constant 1 : i32
    %9 = arith.cmpi eq, %1, %c1_i32 : i32
    %10 = arith.extui %9 : i1 to i32
    %c0_i32_5 = arith.constant 0 : i32
    %11 = arith.cmpi ne, %10, %c0_i32_5 : i32
    scf.if %11 {
      %30 = math.absf %2 : vector<2x8x128xf32>
      %cst = arith.constant 0.000000e+00 : f32
      %31 = vector.broadcast %cst : f32 to vector<2x8x128xf32>
      %32 = arith.subf %31, %30 : vector<2x8x128xf32>
      %33 = math.exp %32 : vector<2x8x128xf32>
      %cst_12 = arith.constant 0.000000e+00 : f32
      %34 = vector.broadcast %cst_12 : f32 to vector<2x8x128xf32>
      %35 = arith.cmpf oge, %2, %34 : vector<2x8x128xf32>
      %cst_13 = arith.constant 1.000000e+00 : f32
      %36 = vector.broadcast %cst_13 : f32 to vector<2x8x128xf32>
      %37 = arith.addf %36, %33 : vector<2x8x128xf32>
      %cst_14 = arith.constant 1.000000e+00 : f32
      %38 = vector.broadcast %cst_14 : f32 to vector<2x8x128xf32>
      %39 = arith.divf %38, %37 : vector<2x8x128xf32>
      %cst_15 = arith.constant 1.000000e+00 : f32
      %40 = vector.broadcast %cst_15 : f32 to vector<2x8x128xf32>
      %41 = arith.addf %40, %33 : vector<2x8x128xf32>
      %42 = arith.divf %33, %41 : vector<2x8x128xf32>
      %43 = arith.select %35, %39, %42 : vector<2x8x128xi1>, vector<2x8x128xf32>
      %c0_16 = arith.constant 0 : index
      %c0_17 = arith.constant 0 : index
      %c0_18 = arith.constant 0 : index
      %44 = vector.load %arg4[%c0_16, %c0_17, %c0_18] : memref<2x8x128xf32, #tpu.memory_space<vmem>>, vector<2x8x128xf32>
      tpu.vector_store %arg4[%c0_16, %c0_17, %c0_18], %43 {strides = array<i32>} : memref<2x8x128xf32, #tpu.memory_space<vmem>>, vector<2x8x128xf32>,
    } else {
    }
    %c2_i32 = arith.constant 2 : i32
    %12 = arith.cmpi eq, %1, %c2_i32 : i32
    %13 = arith.extui %12 : i1 to i32
    %c0_i32_6 = arith.constant 0 : i32
    %14 = arith.cmpi ne, %13, %c0_i32_6 : i32
    scf.if %14 {
      %30 = math.absf %2 : vector<2x8x128xf32>
      %cst = arith.constant -2.000000e+00 : f32
      %31 = vector.broadcast %cst : f32 to vector<2x8x128xf32>
      %32 = arith.mulf %31, %30 : vector<2x8x128xf32>
      %33 = math.exp %32 : vector<2x8x128xf32>
      %cst_12 = arith.constant 1.000000e+00 : f32
      %34 = vector.broadcast %cst_12 : f32 to vector<2x8x128xf32>
      %35 = arith.subf %34, %33 : vector<2x8x128xf32>
      %cst_13 = arith.constant 1.000000e+00 : f32
      %36 = vector.broadcast %cst_13 : f32 to vector<2x8x128xf32>
      %37 = arith.addf %36, %33 : vector<2x8x128xf32>
      %38 = arith.divf %35, %37 : vector<2x8x128xf32>
      %cst_14 = arith.constant 0.000000e+00 : f32
      %39 = vector.broadcast %cst_14 : f32 to vector<2x8x128xf32>
      %40 = arith.cmpf oge, %2, %39 : vector<2x8x128xf32>
      %cst_15 = arith.constant 0.000000e+00 : f32
      %41 = vector.broadcast %cst_15 : f32 to vector<2x8x128xf32>
      %42 = arith.subf %41, %38 : vector<2x8x128xf32>
      %43 = arith.select %40, %38, %42 : vector<2x8x128xi1>, vector<2x8x128xf32>
      %c0_16 = arith.constant 0 : index
      %c0_17 = arith.constant 0 : index
      %c0_18 = arith.constant 0 : index
      %44 = vector.load %arg4[%c0_16, %c0_17, %c0_18] : memref<2x8x128xf32, #tpu.memory_space<vmem>>, vector<2x8x128xf32>
      tpu.vector_store %arg4[%c0_16, %c0_17, %c0_18], %43 {strides = array<i32>} : memref<2x8x128xf32, #tpu.memory_space<vmem>>, vector<2x8x128xf32>,
    } else {
    }
    %c3_i32 = arith.constant 3 : i32
    %15 = arith.cmpi eq, %1, %c3_i32 : i32
    %16 = arith.extui %15 : i1 to i32
    %c0_i32_7 = arith.constant 0 : i32
    %17 = arith.cmpi ne, %16, %c0_i32_7 : i32
    scf.if %17 {
      %cst = arith.constant 0.000000e+00 : f32
      %30 = vector.broadcast %cst : f32 to vector<2x8x128xf32>
      %31 = arith.cmpf oge, %2, %30 : vector<2x8x128xf32>
      %cst_12 = arith.constant 0.00999999977 : f32
      %32 = vector.broadcast %cst_12 : f32 to vector<2x8x128xf32>
      %33 = arith.mulf %32, %2 : vector<2x8x128xf32>
      %34 = arith.select %31, %2, %33 : vector<2x8x128xi1>, vector<2x8x128xf32>
      %c0_13 = arith.constant 0 : index
      %c0_14 = arith.constant 0 : index
      %c0_15 = arith.constant 0 : index
      %35 = vector.load %arg4[%c0_13, %c0_14, %c0_15] : memref<2x8x128xf32, #tpu.memory_space<vmem>>, vector<2x8x128xf32>
      tpu.vector_store %arg4[%c0_13, %c0_14, %c0_15], %34 {strides = array<i32>} : memref<2x8x128xf32, #tpu.memory_space<vmem>>, vector<2x8x128xf32>,
    } else {
    }
    %c4_i32 = arith.constant 4 : i32
    %18 = arith.cmpi eq, %1, %c4_i32 : i32
    %19 = arith.extui %18 : i1 to i32
    %c0_i32_8 = arith.constant 0 : i32
    %20 = arith.cmpi ne, %19, %c0_i32_8 : i32
    scf.if %20 {
      %cst = arith.constant 0.000000e+00 : f32
      %30 = vector.broadcast %cst : f32 to vector<2x8x128xf32>
      %31 = arith.cmpf oge, %2, %30 : vector<2x8x128xf32>
      %cst_12 = arith.constant 0.000000e+00 : f32
      %32 = vector.broadcast %cst_12 : f32 to vector<2x8x128xf32>
      %33 = arith.minimumf %2, %32 : vector<2x8x128xf32>
      %34 = math.exp %33 : vector<2x8x128xf32>
      %cst_13 = arith.constant 1.000000e+00 : f32
      %35 = vector.broadcast %cst_13 : f32 to vector<2x8x128xf32>
      %36 = arith.subf %34, %35 : vector<2x8x128xf32>
      %37 = arith.select %31, %2, %36 : vector<2x8x128xi1>, vector<2x8x128xf32>
      %c0_14 = arith.constant 0 : index
      %c0_15 = arith.constant 0 : index
      %c0_16 = arith.constant 0 : index
      %38 = vector.load %arg4[%c0_14, %c0_15, %c0_16] : memref<2x8x128xf32, #tpu.memory_space<vmem>>, vector<2x8x128xf32>
      tpu.vector_store %arg4[%c0_14, %c0_15, %c0_16], %37 {strides = array<i32>} : memref<2x8x128xf32, #tpu.memory_space<vmem>>, vector<2x8x128xf32>,
    } else {
    }
    %c5_i32 = arith.constant 5 : i32
    %21 = arith.cmpi eq, %1, %c5_i32 : i32
    %22 = arith.extui %21 : i1 to i32
    %c0_i32_9 = arith.constant 0 : i32
    %23 = arith.cmpi ne, %22, %c0_i32_9 : i32
    scf.if %23 {
      %cst = arith.constant 1.702000e+00 : f32
      %30 = vector.broadcast %cst : f32 to vector<2x8x128xf32>
      %31 = arith.mulf %30, %2 : vector<2x8x128xf32>
      %32 = math.absf %31 : vector<2x8x128xf32>
      %cst_12 = arith.constant 0.000000e+00 : f32
      %33 = vector.broadcast %cst_12 : f32 to vector<2x8x128xf32>
      %34 = arith.subf %33, %32 : vector<2x8x128xf32>
      %35 = math.exp %34 : vector<2x8x128xf32>
      %cst_13 = arith.constant 0.000000e+00 : f32
      %36 = vector.broadcast %cst_13 : f32 to vector<2x8x128xf32>
      %37 = arith.cmpf oge, %31, %36 : vector<2x8x128xf32>
      %cst_14 = arith.constant 1.000000e+00 : f32
      %38 = vector.broadcast %cst_14 : f32 to vector<2x8x128xf32>
      %39 = arith.addf %38, %35 : vector<2x8x128xf32>
      %cst_15 = arith.constant 1.000000e+00 : f32
      %40 = vector.broadcast %cst_15 : f32 to vector<2x8x128xf32>
      %41 = arith.divf %40, %39 : vector<2x8x128xf32>
      %cst_16 = arith.constant 1.000000e+00 : f32
      %42 = vector.broadcast %cst_16 : f32 to vector<2x8x128xf32>
      %43 = arith.addf %42, %35 : vector<2x8x128xf32>
      %44 = arith.divf %35, %43 : vector<2x8x128xf32>
      %45 = arith.select %37, %41, %44 : vector<2x8x128xi1>, vector<2x8x128xf32>
      %46 = arith.mulf %2, %45 : vector<2x8x128xf32>
      %c0_17 = arith.constant 0 : index
      %c0_18 = arith.constant 0 : index
      %c0_19 = arith.constant 0 : index
      %47 = vector.load %arg4[%c0_17, %c0_18, %c0_19] : memref<2x8x128xf32, #tpu.memory_space<vmem>>, vector<2x8x128xf32>
      tpu.vector_store %arg4[%c0_17, %c0_18, %c0_19], %46 {strides = array<i32>} : memref<2x8x128xf32, #tpu.memory_space<vmem>>, vector<2x8x128xf32>,
    } else {
    }
    %c6_i32 = arith.constant 6 : i32
    %24 = arith.cmpi eq, %1, %c6_i32 : i32
    %25 = arith.extui %24 : i1 to i32
    %c0_i32_10 = arith.constant 0 : i32
    %26 = arith.cmpi ne, %25, %c0_i32_10 : i32
    scf.if %26 {
      %30 = math.absf %2 : vector<2x8x128xf32>
      %cst = arith.constant 0.000000e+00 : f32
      %31 = vector.broadcast %cst : f32 to vector<2x8x128xf32>
      %32 = arith.subf %31, %30 : vector<2x8x128xf32>
      %33 = math.exp %32 : vector<2x8x128xf32>
      %cst_12 = arith.constant 0.000000e+00 : f32
      %34 = vector.broadcast %cst_12 : f32 to vector<2x8x128xf32>
      %35 = arith.cmpf oge, %2, %34 : vector<2x8x128xf32>
      %cst_13 = arith.constant 1.000000e+00 : f32
      %36 = vector.broadcast %cst_13 : f32 to vector<2x8x128xf32>
      %37 = arith.addf %36, %33 : vector<2x8x128xf32>
      %cst_14 = arith.constant 1.000000e+00 : f32
      %38 = vector.broadcast %cst_14 : f32 to vector<2x8x128xf32>
      %39 = arith.divf %38, %37 : vector<2x8x128xf32>
      %cst_15 = arith.constant 1.000000e+00 : f32
      %40 = vector.broadcast %cst_15 : f32 to vector<2x8x128xf32>
      %41 = arith.addf %40, %33 : vector<2x8x128xf32>
      %42 = arith.divf %33, %41 : vector<2x8x128xf32>
      %43 = arith.select %35, %39, %42 : vector<2x8x128xi1>, vector<2x8x128xf32>
      %44 = arith.mulf %2, %43 : vector<2x8x128xf32>
      %c0_16 = arith.constant 0 : index
      %c0_17 = arith.constant 0 : index
      %c0_18 = arith.constant 0 : index
      %45 = vector.load %arg4[%c0_16, %c0_17, %c0_18] : memref<2x8x128xf32, #tpu.memory_space<vmem>>, vector<2x8x128xf32>
      tpu.vector_store %arg4[%c0_16, %c0_17, %c0_18], %44 {strides = array<i32>} : memref<2x8x128xf32, #tpu.memory_space<vmem>>, vector<2x8x128xf32>,
    } else {
    }
    %c7_i32 = arith.constant 7 : i32
    %27 = arith.cmpi eq, %1, %c7_i32 : i32
    %28 = arith.extui %27 : i1 to i32
    %c0_i32_11 = arith.constant 0 : i32
    %29 = arith.cmpi ne, %28, %c0_i32_11 : i32
    scf.if %29 {
      %c0_12 = arith.constant 0 : index
      %c0_13 = arith.constant 0 : index
      %c0_14 = arith.constant 0 : index
      %30 = vector.load %arg4[%c0_12, %c0_13, %c0_14] : memref<2x8x128xf32, #tpu.memory_space<vmem>>, vector<2x8x128xf32>
      tpu.vector_store %arg4[%c0_12, %c0_13, %c0_14], %2 {strides = array<i32>} : memref<2x8x128xf32, #tpu.memory_space<vmem>>, vector<2x8x128xf32>,
    } else {
    }
    return
  }
  func.func @transform_0(%arg0: i32, %arg1: memref<1xi32, #tpu.memory_space<smem>>) -> (i32, i32, i32) {
    %c0_i32 = arith.constant 0 : i32
    %c0_i32_0 = arith.constant 0 : i32
    %c0_i32_1 = arith.constant 0 : i32
    return %c0_i32, %arg0, %c0_i32_0 : i32, i32, i32
  }
  func.func @transform_1(%arg0: i32, %arg1: memref<1xi32, #tpu.memory_space<smem>>) -> (i32, i32) {
    %c0_i32 = arith.constant 0 : i32
    %c0_i32_0 = arith.constant 0 : i32
    return %arg0, %c0_i32 : i32, i32
  }
  func.func @transform_2(%arg0: i32, %arg1: memref<1xi32, #tpu.memory_space<smem>>) -> (i32, i32, i32) {
    %c0_i32 = arith.constant 0 : i32
    %c0_i32_0 = arith.constant 0 : i32
    %c0_i32_1 = arith.constant 0 : i32
    return %c0_i32, %arg0, %c0_i32_0 : i32, i32, i32
  }
}

</mosaic_0001>

<bundles_post_ra>
// kernel: tpu_custom_call.1
= control target key start
LH: loop header
LB: loop body
LE: loop exit
PB: predicated region body
PF: predicated region fallthrough
CT: control target
= control target key end

     0   :  { %9 = vsyncpa [#allocation5], 0  ;;  %s651_s0 = inlined_call_operand.<no memory space> [shape: s32[1], index: 0, kind: input, shape index: {}]   ;;  %s652_s1 = inlined_call_operand.hbm [shape: f32[2,8,128], index: 1, kind: input, shape index: {}]   ;;  %s653_s2 = inlined_call_operand.hbm [shape: s32[8,128], index: 2, kind: input, shape index: {}]   ;;  %s654_s3 = inlined_call_operand.hbm [shape: f32[2,8,128], index: 3, kind: output, shape index: {}]  }
   0x1   :  { %10 = vsyncpa [#allocation8], 0 }
   0x2   :  { %11 = vsyncpa [#allocation6], 0  ;;  %s469_s12 = smov [#allocation4]   ;;  %s397_s16 = scalar_lea.hbm %s652_s1, 256 }
   0x3   :  { %s17_s13 = sshll.u32 %s469_s12, 4  ;;  %p398_p0 = scmp.ne.s32.totalorder %s652_s1, %s397_s16  ;;  %s18_s13 = int_to_ptr.vmem [resolvable:$true] %s17_s13 }
   0x4   :  { %p401_p1 = scmp.lt.u32.totalorder %s397_s16, %s652_s1 }
   0x6   :  { %p403_p2 = pnand %p401_p1, %p398_p0 }
   0x8   :  { %406 = shalt.err (!%p403_p2)
}
   0x9   :  { %s407_s21 = scalar_lea.vmem %s18_s13, 256  ;;  %p412_p4 = scmp.lt.s32.totalorder %s18_s13, %s18_s13 }
   0xa   :  { %p408_p3 = scmp.ne.s32.totalorder %s18_s13, %s407_s21  ;;  %p413_p5 = scmp.lt.s32.totalorder %s407_s21, %s407_s21 }
   0xc   :  { %p414_p6 = por %p413_p5, %p412_p4 }
   0xe   :  { %p415_p7 = pnand %p414_p6, %p408_p3 }
  0x10   :  { %418 = shalt.err (!%p415_p7)
}
  0x11   :  { %s470_s22 = smov 128   ;;  %s471_s23 = smov 8  }
  0x12   :  { %23 = dma.hbm_to_vmem [thread:$0]  %s652_s1, 256, %s18_s13, [#allocation5], %s470_s22, %s470_s22, %s471_s23  }
  0x13   :  { %s472_s26 = smov [#allocation7]   ;;  %s419_s30 = scalar_lea.hbm %s653_s2, 128 }
  0x14   :  { %s30_s27 = sshll.u32 %s472_s26, 4  ;;  %p420_p8 = scmp.ne.s32.totalorder %s653_s2, %s419_s30  ;;  %s31_s27 = int_to_ptr.vmem [resolvable:$true] %s30_s27 }
  0x15   :  { %p423_p9 = scmp.lt.u32.totalorder %s419_s30, %s653_s2 }
  0x17   :  { %p425_p10 = pnand %p423_p9, %p420_p8 }
  0x19   :  { %428 = shalt.err (!%p425_p10)
}
  0x1a   :  { %s429_s8 = scalar_lea.vmem %s31_s27, 128  ;;  %p434_p12 = scmp.lt.s32.totalorder %s31_s27, %s31_s27 }
  0x1b   :  { %p430_p11 = scmp.ne.s32.totalorder %s31_s27, %s429_s8  ;;  %p435_p13 = scmp.lt.s32.totalorder %s429_s8, %s429_s8 }
  0x1d   :  { %p436_p0 = por %p435_p13, %p434_p12 }
  0x1f   :  { %p437_p1 = pnand %p436_p0, %p430_p11 }
  0x21   :  { %440 = shalt.err (!%p437_p1)
}
  0x22   :  { %33 = dma.hbm_to_vmem [thread:$0]  %s653_s2, 128, %s31_s27, [#allocation8]  }
  0x23   :  { %463 = dma.done.wait [#allocation5], 256  }
  0x24   :  { %464 = vsyncadd [#allocation5], 4294967040 }
  0x25   :  { %465 = dma.done.wait [#allocation8], 128  }
  0x26   :  { %466 = vsyncadd [#allocation8], 4294967168  ;;  %v521_v0 = vld [vmem:[#allocation4] sm:$0xff]  ;;  %v523_v1 = vld [vmem:[#allocation4 + $0x8] sm:$0xff]  ;;  %p323_p2 = scmp.ge.s32.totalorder %s651_s0, 0 }
  0x27   :  { %v48_v2 = vand.u32 (!%p323_p2), 2147483647, %v521_v0  ;;  %v49_v5 = vand.u32 (!%p323_p2), 2147483647, %v523_v1  ;;  %v47_v24 = vld [vmem:[#allocation7] sm:$0xff] (!%p323_p2)  ;;  %vm50_vm0 = vcmp.ge.f32.partialorder (!%p323_p2), %v521_v0, 0.0 }
  0x28   :  { %46 = sbr.rel (%p323_p2) target bundleno = 85 (0x55), region = 21  ;;  %v100_v26 = vmul.f32 (!%p323_p2), 0.01, %v521_v0  ;;  %v98_v28 = vmax.f32 (!%p323_p2), %v521_v0, 0.0  ;;  %vm112_vm1 = vcmp.eq.s32.totalorder (!%p323_p2), %v47_v24, 6  ;;  %vm51_vm2 = vcmp.ge.f32.partialorder (!%p323_p2), %v523_v1, 0.0 }
  0x29   :  { %v52_v3 = vsub.f32 (!%p323_p2), 0.0, %v48_v2  ;;  %v82_v4 = vmul.f32 (!%p323_p2), -1.702, %v48_v2  ;;  %v53_v8 = vsub.f32 (!%p323_p2), 0.0, %v49_v5  ;;  %v83_v9 = vmul.f32 (!%p323_p2), -1.702, %v49_v5 }
  0x2a   :  { %vm117_vm3 = vcmp.eq.s32.totalorder (!%p323_p2), %v47_v24, 5  ;;  %vm122_vm4 = vcmp.eq.s32.totalorder (!%p323_p2), %v47_v24, 4  ;;  %vm127_vm5 = vcmp.eq.s32.totalorder (!%p323_p2), %v47_v24, 3  ;;  %vm132_vm6 = vcmp.eq.s32.totalorder (!%p323_p2), %v47_v24, 2 }
  0x2b   :  { %v54_v6 = vmul.f32 (!%p323_p2), 1.442695, %v52_v3  ;;  %v84_v7 = vmul.f32 (!%p323_p2), 1.442695, %v82_v4  ;;  %v56_v10 = vmul.f32 (!%p323_p2), 1.442695, %v53_v8  ;;  %v102_v38 = vsel (!%p323_p2), %vm50_vm0, %v521_v0, %v100_v26 }
  0x2c   :  { %v86_v11 = vmul.f32 (!%p323_p2), 1.442695, %v83_v9  ;;  %v101_v39 = vmul.f32 (!%p323_p2), 0.01, %v523_v1  ;;  %vm137_vm7 = vcmp.eq.s32.totalorder (!%p323_p2), %v47_v24, 1  ;;  %vm142_vm8 = vcmp.eq.s32.totalorder (!%p323_p2), %v47_v24, 0 }
  0x2d   :  { %341 = vpow2.f32 (!%p323_p2), %v54_v6  ;;  %v99_v6 = vmax.f32 (!%p323_p2), %v523_v1, 0.0 }
  0x2e   :  { %343 = vpow2.f32 (!%p323_p2), %v84_v7  ;;  %v103_v62 = vsel (!%p323_p2), %vm51_vm2, %v523_v1, %v101_v39 }
  0x2f   :  { %345 = vpow2.f32 %v56_v10 }
  0x30   :  { %347 = vpow2.f32 %v86_v11 }
  0x37   :  { %v342_v12 = vpop.eup %341 }
  0x38   :  { %v344_v13 = vpop.eup %343  ;;  %v58_v14 = vadd.f32 1.0, %v342_v12  ;;  %v68_v15 = vmul.f32 %v342_v12, %v342_v12  ;;  %v324_v31 = vadd.f32 -1.0, %v342_v12 }
  0x39   :  { %v88_v16 = vadd.f32 1.0, %v344_v13  ;;  %v346_v17 = vpop.eup %345 }
  0x3a   :  { %349 = vrcp.f32 %v58_v14  ;;  %v72_v18 = vadd.f32 1.0, %v68_v15  ;;  %v348_v19 = vpop.eup %347  ;;  %v59_v20 = vadd.f32 1.0, %v346_v17  ;;  %v69_v21 = vmul.f32 %v346_v17, %v346_v17 }
  0x3b   :  { %351 = vrcp.f32 %v88_v16  ;;  %v89_v22 = vadd.f32 1.0, %v348_v19  ;;  %v70_v25 = vsub.f32 1.0, %v68_v15  ;;  %v325_v44 = vadd.f32 -1.0, %v346_v17 }
  0x3c   :  { %353 = vrcp.f32 %v72_v18  ;;  %v73_v23 = vadd.f32 1.0, %v69_v21  ;;  %v71_v34 = vsub.f32 1.0, %v69_v21  ;;  %v106_v47 = vsel %vm50_vm0, %v521_v0, %v324_v31 }
  0x3d   :  { %355 = vrcp.f32 %v59_v20  ;;  %v107_v59 = vsel %vm51_vm2, %v523_v1, %v325_v44 }
  0x3e   :  { %357 = vrcp.f32 %v89_v22 }
  0x3f   :  { %359 = vrcp.f32 %v73_v23 }
  0x44   :  { %v350_v27 = vpop.eup %349 }
  0x45   :  { %v352_v29 = vpop.eup %351  ;;  %v64_v30 = vmul.f32 %v350_v27, %v342_v12 }
  0x46   :  { %v354_v32 = vpop.eup %353  ;;  %v94_v33 = vmul.f32 %v352_v29, %v344_v13 }
  0x47   :  { %v356_v35 = vpop.eup %355  ;;  %v66_v36 = vsel %vm50_vm0, %v350_v27, %v64_v30  ;;  %v75_v37 = vmul.f32 %v354_v32, %v70_v25 }
  0x48   :  { %v358_v40 = vpop.eup %357  ;;  %v96_v41 = vsel %vm50_vm0, %v352_v29, %v94_v33  ;;  %v110_v42 = vmul.f32 %v66_v36, %v521_v0  ;;  %v65_v43 = vmul.f32 %v356_v35, %v346_v17 }
  0x49   :  { %v360_v45 = vpop.eup %359  ;;  %v78_v46 = vsub.f32 0.0, %v75_v37  ;;  %v108_v48 = vmul.f32 %v96_v41, %v521_v0  ;;  %v95_v49 = vmul.f32 %v358_v40, %v348_v19 }
  0x4a   :  { %v115_v50 = vsel %vm112_vm1, %v110_v42, %v521_v0  ;;  %v67_v51 = vsel %vm51_vm2, %v356_v35, %v65_v43  ;;  %v77_v52 = vmul.f32 %v360_v45, %v71_v34 }
  0x4b   :  { %v80_v53 = vsel %vm50_vm0, %v75_v37, %v78_v46  ;;  %v120_v54 = vsel %vm117_vm3, %v108_v48, %v115_v50  ;;  %v97_v55 = vsel %vm51_vm2, %v358_v40, %v95_v49  ;;  %v111_v56 = vmul.f32 %v67_v51, %v523_v1 }
  0x4c   :  { %v125_v57 = vsel %vm122_vm4, %v106_v47, %v120_v54  ;;  %v79_v58 = vsub.f32 0.0, %v77_v52  ;;  %v109_v60 = vmul.f32 %v97_v55, %v523_v1 }
  0x4d   :  { %v130_v61 = vsel %vm127_vm5, %v102_v38, %v125_v57  ;;  %v116_v63 = vsel %vm112_vm1, %v111_v56, %v523_v1 }
  0x4e   :  { %v135_v2 = vsel %vm132_vm6, %v80_v53, %v130_v61  ;;  %v81_v3 = vsel %vm51_vm2, %v77_v52, %v79_v58  ;;  %v121_v4 = vsel %vm117_vm3, %v109_v60, %v116_v63 }
  0x4f   :  { %v140_v5 = vsel %vm137_vm7, %v66_v36, %v135_v2  ;;  %v126_v7 = vsel %vm122_vm4, %v107_v59, %v121_v4 }
  0x50   :  { %v145_v8 = vsel %vm142_vm8, %v98_v28, %v140_v5  ;;  %v131_v9 = vsel %vm127_vm5, %v103_v62, %v126_v7 }
  0x51   :  { %147 = vst [vmem:[#allocation9] sm:$0xff] %v145_v8  ;;  %v136_v10 = vsel %vm132_vm6, %v81_v3, %v131_v9 }
  0x52   :  { %v141_v11 = vsel %vm137_vm7, %v67_v51, %v136_v10 }
  0x53   :  { %v146_v12 = vsel %vm142_vm8, %v99_v6, %v141_v11 }
  0x54   :  { %148 = vst [vmem:[#allocation9 + $0x8] sm:$0xff] %v146_v12 }
  0x55 PF:  { %p326_p3 = scmp.ne.s32.totalorder %s651_s0, 0 }
  0x56   :  { %v153_v13 = vmax.f32 (!%p326_p3), %v521_v0, 0.0  ;;  %v154_v14 = vmax.f32 (!%p326_p3), %v523_v1, 0.0 }
  0x57   :  { %152 = sbr.rel (%p326_p3) target bundleno = 94 (0x5e), region = 25 }
  0x58   :  { %155 = vst [vmem:[#allocation9] sm:$0xff] (!%p326_p3), %v153_v13  ;;  %156 = vst [vmem:[#allocation9 + $0x8] sm:$0xff] (!%p326_p3), %v154_v14 }
  0x5e PF:  { %p327_p4 = scmp.ne.s32.totalorder %s651_s0, 1 }
  0x5f   :  { %v161_v15 = vand.u32 (!%p327_p4), 2147483647, %v521_v0  ;;  %v162_v16 = vand.u32 (!%p327_p4), 2147483647, %v523_v1  ;;  %vm169_vm9 = vcmp.ge.f32.partialorder (!%p327_p4), %v521_v0, 0.0  ;;  %vm170_vm10 = vcmp.ge.f32.partialorder (!%p327_p4), %v523_v1, 0.0 }
  0x60   :  { %160 = sbr.rel (%p327_p4) target bundleno = 130 (0x82), region = 29 }
  0x61   :  { %v163_v17 = vsub.f32 (!%p327_p4), 0.0, %v161_v15  ;;  %v164_v18 = vsub.f32 (!%p327_p4), 0.0, %v162_v16 }
  0x63   :  { %v165_v19 = vmul.f32 (!%p327_p4), 1.442695, %v163_v17  ;;  %v167_v20 = vmul.f32 (!%p327_p4), 1.442695, %v164_v18 }
  0x65   :  { %361 = vpow2.f32 (!%p327_p4), %v165_v19 }
  0x66   :  { %363 = vpow2.f32 (!%p327_p4), %v167_v20 }
  0x6f   :  { %v362_v21 = vpop.eup %361 }
  0x70   :  { %v364_v22 = vpop.eup %363  ;;  %v171_v23 = vadd.f32 1.0, %v362_v21 }
  0x71   :  { %v172_v24 = vadd.f32 1.0, %v364_v22 }
  0x72   :  { %365 = vrcp.f32 %v171_v23 }
  0x73   :  { %367 = vrcp.f32 %v172_v24 }
  0x7c   :  { %v366_v25 = vpop.eup %365 }
  0x7d   :  { %v368_v26 = vpop.eup %367  ;;  %v177_v27 = vmul.f32 %v366_v25, %v362_v21 }
  0x7e   :  { %v178_v28 = vmul.f32 %v368_v26, %v364_v22 }
  0x7f   :  { %v179_v29 = vsel %vm169_vm9, %v366_v25, %v177_v27 }
  0x80   :  { %181 = vst [vmem:[#allocation9] sm:$0xff] %v179_v29  ;;  %v180_v30 = vsel %vm170_vm10, %v368_v26, %v178_v28 }
  0x81   :  { %182 = vst [vmem:[#allocation9 + $0x8] sm:$0xff] %v180_v30 }
  0x82 PF:  { %p328_p5 = scmp.ne.s32.totalorder %s651_s0, 2 }
  0x83   :  { %v187_v31 = vand.u32 (!%p328_p5), 2147483647, %v521_v0  ;;  %v188_v32 = vand.u32 (!%p328_p5), 2147483647, %v523_v1  ;;  %vm203_vm11 = vcmp.ge.f32.partialorder (!%p328_p5), %v521_v0, 0.0  ;;  %vm204_vm12 = vcmp.ge.f32.partialorder (!%p328_p5), %v523_v1, 0.0 }
  0x84   :  { %186 = sbr.rel (%p328_p5) target bundleno = 168 (0xa8), region = 33 }
  0x85   :  { %v189_v33 = vmul.f32 (!%p328_p5), -2.0, %v187_v31  ;;  %v190_v34 = vmul.f32 (!%p328_p5), -2.0, %v188_v32 }
  0x87   :  { %v191_v35 = vmul.f32 (!%p328_p5), 1.442695, %v189_v33  ;;  %v193_v36 = vmul.f32 (!%p328_p5), 1.442695, %v190_v34 }
  0x89   :  { %369 = vpow2.f32 (!%p328_p5), %v191_v35 }
  0x8a   :  { %371 = vpow2.f32 (!%p328_p5), %v193_v36 }
  0x93   :  { %v370_v37 = vpop.eup %369 }
  0x94   :  { %v372_v38 = vpop.eup %371  ;;  %v197_v39 = vadd.f32 1.0, %v370_v37  ;;  %v195_v41 = vsub.f32 1.0, %v370_v37 }
  0x95   :  { %v198_v40 = vadd.f32 1.0, %v372_v38  ;;  %v196_v42 = vsub.f32 1.0, %v372_v38 }
  0x96   :  { %373 = vrcp.f32 %v197_v39 }
  0x97   :  { %375 = vrcp.f32 %v198_v40 }
  0xa0   :  { %v374_v43 = vpop.eup %373 }
  0xa1   :  { %v376_v44 = vpop.eup %375  ;;  %v200_v45 = vmul.f32 %v374_v43, %v195_v41 }
  0xa2   :  { %v202_v46 = vmul.f32 %v376_v44, %v196_v42 }
  0xa3   :  { %v205_v47 = vsub.f32 0.0, %v200_v45 }
  0xa4   :  { %v206_v48 = vsub.f32 0.0, %v202_v46 }
  0xa5   :  { %v207_v49 = vsel %vm203_vm11, %v200_v45, %v205_v47 }
  0xa6   :  { %209 = vst [vmem:[#allocation9] sm:$0xff] %v207_v49  ;;  %v208_v50 = vsel %vm204_vm12, %v202_v46, %v206_v48 }
  0xa7   :  { %210 = vst [vmem:[#allocation9 + $0x8] sm:$0xff] %v208_v50 }
  0xa8 PF:  { %p329_p6 = scmp.ne.s32.totalorder %s651_s0, 3 }
  0xa9   :  { %vm215_vm13 = vcmp.ge.f32.partialorder (!%p329_p6), %v521_v0, 0.0  ;;  %v217_v51 = vmul.f32 (!%p329_p6), 0.01, %v521_v0  ;;  %vm216_vm14 = vcmp.ge.f32.partialorder (!%p329_p6), %v523_v1, 0.0  ;;  %v218_v52 = vmul.f32 (!%p329_p6), 0.01, %v523_v1 }
  0xaa   :  { %214 = sbr.rel (%p329_p6) target bundleno = 177 (0xb1), region = 37 }
  0xab   :  { %v219_v53 = vsel (!%p329_p6), %vm215_vm13, %v521_v0, %v217_v51  ;;  %v220_v54 = vsel (!%p329_p6), %vm216_vm14, %v523_v1, %v218_v52 }
  0xac   :  { %221 = vst [vmem:[#allocation9] sm:$0xff] (!%p329_p6), %v219_v53  ;;  %222 = vst [vmem:[#allocation9 + $0x8] sm:$0xff] (!%p329_p6), %v220_v54 }
  0xb1 PF:  { %p330_p7 = scmp.ne.s32.totalorder %s651_s0, 4 }
  0xb2   :  { %v229_v55 = vmin.f32 (!%p330_p7), %v521_v0, 0.0  ;;  %v230_v56 = vmin.f32 (!%p330_p7), %v523_v1, 0.0  ;;  %vm227_vm15 = vcmp.ge.f32.partialorder (!%p330_p7), %v521_v0, 0.0  ;;  %vm228_vm0 = vcmp.ge.f32.partialorder (!%p330_p7), %v523_v1, 0.0 }
  0xb3   :  { %226 = sbr.rel (%p330_p7) target bundleno = 198 (0xc6), region = 41 }
  0xb4   :  { %v231_v57 = vmul.f32 (!%p330_p7), 1.442695, %v229_v55  ;;  %v233_v58 = vmul.f32 (!%p330_p7), 1.442695, %v230_v56 }
  0xb6   :  { %377 = vpow2.f32 (!%p330_p7), %v231_v57 }
  0xb7   :  { %379 = vpow2.f32 (!%p330_p7), %v233_v58 }
  0xc0   :  { %v378_v59 = vpop.eup %377 }
  0xc1   :  { %v380_v60 = vpop.eup %379  ;;  %v331_v61 = vadd.f32 -1.0, %v378_v59 }
  0xc2   :  { %v332_v62 = vadd.f32 -1.0, %v380_v60 }
  0xc3   :  { %v237_v63 = vsel %vm227_vm15, %v521_v0, %v331_v61 }
  0xc4   :  { %239 = vst [vmem:[#allocation9] sm:$0xff] %v237_v63  ;;  %v238_v2 = vsel %vm228_vm0, %v523_v1, %v332_v62 }
  0xc5   :  { %240 = vst [vmem:[#allocation9 + $0x8] sm:$0xff] %v238_v2 }
  0xc6 PF:  { %p333_p8 = scmp.ne.s32.totalorder %s651_s0, 5 }
  0xc7   :  { %v245_v3 = vmul.f32 (!%p333_p8), 1.702, %v521_v0  ;;  %v246_v4 = vmul.f32 (!%p333_p8), 1.702, %v523_v1 }
  0xc8   :  { %244 = sbr.rel (%p333_p8) target bundleno = 238 (0xee), region = 45 }
  0xc9   :  { %v247_v5 = vand.u32 (!%p333_p8), 2147483647, %v245_v3  ;;  %v248_v6 = vand.u32 (!%p333_p8), 2147483647, %v246_v4  ;;  %vm255_vm1 = vcmp.ge.f32.partialorder (!%p333_p8), %v245_v3, 0.0  ;;  %vm256_vm2 = vcmp.ge.f32.partialorder (!%p333_p8), %v246_v4, 0.0 }
  0xcb   :  { %v249_v7 = vsub.f32 (!%p333_p8), 0.0, %v247_v5  ;;  %v250_v8 = vsub.f32 (!%p333_p8), 0.0, %v248_v6 }
  0xcd   :  { %v251_v9 = vmul.f32 (!%p333_p8), 1.442695, %v249_v7  ;;  %v253_v10 = vmul.f32 (!%p333_p8), 1.442695, %v250_v8 }
  0xcf   :  { %381 = vpow2.f32 %v251_v9 }
  0xd0   :  { %383 = vpow2.f32 %v253_v10 }
  0xd9   :  { %v382_v11 = vpop.eup %381 }
  0xda   :  { %v384_v12 = vpop.eup %383  ;;  %v257_v13 = vadd.f32 1.0, %v382_v11 }
  0xdb   :  { %v258_v14 = vadd.f32 1.0, %v384_v12 }
  0xdc   :  { %385 = vrcp.f32 %v257_v13 }
  0xdd   :  { %387 = vrcp.f32 %v258_v14 }
  0xe6   :  { %v386_v15 = vpop.eup %385 }
  0xe7   :  { %v388_v16 = vpop.eup %387  ;;  %v263_v17 = vmul.f32 %v386_v15, %v382_v11 }
  0xe8   :  { %v264_v18 = vmul.f32 %v388_v16, %v384_v12 }
  0xe9   :  { %v265_v19 = vsel %vm255_vm1, %v386_v15, %v263_v17 }
  0xea   :  { %v267_v20 = vmul.f32 %v265_v19, %v521_v0  ;;  %v266_v21 = vsel %vm256_vm2, %v388_v16, %v264_v18 }
  0xeb   :  { %v268_v22 = vmul.f32 %v266_v21, %v523_v1 }
  0xec   :  { %269 = vst [vmem:[#allocation9] sm:$0xff] %v267_v20 }
  0xed   :  { %270 = vst [vmem:[#allocation9 + $0x8] sm:$0xff] %v268_v22 }
  0xee PF:  { %p334_p9 = scmp.ne.s32.totalorder %s651_s0, 6 }
  0xef   :  { %v275_v23 = vand.u32 (!%p334_p9), 2147483647, %v521_v0  ;;  %v276_v24 = vand.u32 (!%p334_p9), 2147483647, %v523_v1  ;;  %vm283_vm3 = vcmp.ge.f32.partialorder (!%p334_p9), %v521_v0, 0.0  ;;  %vm284_vm4 = vcmp.ge.f32.partialorder (!%p334_p9), %v523_v1, 0.0 }
  0xf0   :  { %274 = sbr.rel (%p334_p9) target bundleno = 276 (0x114), region = 49 }
  0xf1   :  { %v277_v25 = vsub.f32 (!%p334_p9), 0.0, %v275_v23  ;;  %v278_v26 = vsub.f32 (!%p334_p9), 0.0, %v276_v24 }
  0xf3   :  { %v279_v27 = vmul.f32 (!%p334_p9), 1.442695, %v277_v25  ;;  %v281_v28 = vmul.f32 (!%p334_p9), 1.442695, %v278_v26 }
  0xf5   :  { %389 = vpow2.f32 (!%p334_p9), %v279_v27 }
  0xf6   :  { %391 = vpow2.f32 (!%p334_p9), %v281_v28 }
  0xff   :  { %v390_v29 = vpop.eup %389 }
 0x100   :  { %v392_v30 = vpop.eup %391  ;;  %v285_v31 = vadd.f32 1.0, %v390_v29 }
 0x101   :  { %v286_v32 = vadd.f32 1.0, %v392_v30 }
 0x102   :  { %393 = vrcp.f32 %v285_v31 }
 0x103   :  { %395 = vrcp.f32 %v286_v32 }
 0x10c   :  { %v394_v33 = vpop.eup %393 }
 0x10d   :  { %v396_v34 = vpop.eup %395  ;;  %v291_v35 = vmul.f32 %v394_v33, %v390_v29 }
 0x10e   :  { %v292_v36 = vmul.f32 %v396_v34, %v392_v30 }
 0x10f   :  { %v293_v37 = vsel %vm283_vm3, %v394_v33, %v291_v35 }
 0x110   :  { %v295_v38 = vmul.f32 %v293_v37, %v521_v0  ;;  %v294_v39 = vsel %vm284_vm4, %v396_v34, %v292_v36 }
 0x111   :  { %v296_v40 = vmul.f32 %v294_v39, %v523_v1 }
 0x112   :  { %297 = vst [vmem:[#allocation9] sm:$0xff] %v295_v38 }
 0x113   :  { %298 = vst [vmem:[#allocation9 + $0x8] sm:$0xff] %v296_v40 }
 0x114 PF:  { %p335_p10 = scmp.ne.s32.totalorder %s651_s0, 7 }
 0x115   :  { %303 = vst [vmem:[#allocation9] sm:$0xff] (!%p335_p10), %v521_v0  ;;  %304 = vst [vmem:[#allocation9 + $0x8] sm:$0xff] (!%p335_p10), %v523_v1 }
 0x116   :  { %302 = sbr.rel (%p335_p10) target bundleno = 285 (0x11d), region = 53 }
 0x11d PF:  { %s473_s29 = smov [#allocation9]  }
 0x11e   :  { %s310_s30 = sshll.u32 %s473_s29, 4  ;;  %s311_s30 = int_to_ptr.vmem [resolvable:$true] %s310_s30 }
 0x11f   :  { %s441_s4 = scalar_lea.vmem %s311_s30, 256  ;;  %p446_p12 = scmp.lt.s32.totalorder %s311_s30, %s311_s30 }
 0x120   :  { %p442_p11 = scmp.ne.s32.totalorder %s311_s30, %s441_s4  ;;  %p447_p13 = scmp.lt.s32.totalorder %s441_s4, %s441_s4 }
 0x122   :  { %p448_p0 = por %p447_p13, %p446_p12 }
 0x124   :  { %p449_p1 = pnand %p448_p0, %p442_p11 }
 0x126   :  { %452 = shalt.err (!%p449_p1)
}
 0x127   :  { %s453_s0 = scalar_lea.hbm %s654_s3, 256 }
 0x128   :  { %p454_p2 = scmp.ne.s32.totalorder %s654_s3, %s453_s0  ;;  %p457_p3 = scmp.lt.u32.totalorder %s453_s0, %s654_s3 }
 0x12a   :  { %p459_p4 = pnand %p457_p3, %p454_p2 }
 0x12c   :  { %462 = shalt.err (!%p459_p4)
}
 0x12d   :  { %316 = dma.vmem_to_hbm [thread:$0]  %s311_s30, 256, %s654_s3, [#allocation6], %s470_s22, %s470_s22, %s471_s23  }
 0x12e   :  { %467 = dma.done.wait [#allocation6], 256  }
 0x12f   :  { %468 = vsyncadd [#allocation6], 4294967040 }
 0x130   :  { %320 = vsyncpa [#allocation5], 1 }
 0x131   :  { %321 = vsyncpa [#allocation8], 1 }
 0x132   :  { %322 = vsyncpa [#allocation6], 1 }

</bundles_post_ra>
